<compile_context>
chip_gen: v7x
topology: tpu7x:2x2x1
jax: 0.10.0
libtpu: 0.0.40
codegen_flags: <defaults>
</compile_context>

<pallas_src>
import jax
import jax.numpy as jnp
from jax import lax
from jax.experimental import pallas as pl
from jax.experimental.pallas import tpu as pltpu


def _round_up(v, m):
    return ((v + m - 1) // m) * m


def _pad_to(a, shape):
    pads = [(0, t - s) for s, t in zip(a.shape, shape)]
    return jnp.pad(a, pads)


def rgin_kernel(adj_ref, x_ref, wsl_ref, bsl_ref,
                w1_ref, b1_ref, gamma_ref, beta_ref,
                w2_ref, b2_ref, out_ref):
    r = pl.program_id(0)
    n = out_ref.shape[0]                      # real (unpadded) node count
    inv_n = jnp.float32(1.0 / n)

    x_full = x_ref[...]                       # (Nk_p, Fin_p) bf16; rows >= n are zero
    x_rows = x_full[:n, :]                    # (N, Fin_p) real rows (static slice)
    x_f32 = x_rows.astype(jnp.float32)

    # GIN aggregation for this relation: adj_r (N, Nk_p) @ x (Nk_p, Fin_p).
    agg = jnp.dot(adj_ref[...], x_full, preferred_element_type=jnp.float32)

    # eps = 0: h = x + neighbor sum
    h = (x_f32 + agg).astype(jnp.bfloat16)
    z = jnp.dot(h, w1_ref[...], preferred_element_type=jnp.float32) + b1_ref[...]

    # BatchNorm1d (training mode, biased variance), two-pass stats folded into a
    # single scale/shift.  Padded feature columns stay identically zero.
    mu = jnp.sum(z, axis=0, keepdims=True) * inv_n
    zc = z - mu
    var = jnp.sum(zc * zc, axis=0, keepdims=True) * inv_n
    scale = gamma_ref[...] * lax.rsqrt(var + 1e-5)
    a = jnp.maximum(zc * scale + beta_ref[...], 0.0)       # BN + ReLU

    out_ref[...] = (jnp.dot(a.astype(jnp.bfloat16), w2_ref[...],
                            preferred_element_type=jnp.float32) + b2_ref[...])

    # Fold the self-loop linear layer into relation 0's output slab.
    @pl.when(r == 0)
    def _():
        out_ref[...] += (jnp.dot(x_rows, wsl_ref[...],
                                 preferred_element_type=jnp.float32) + bsl_ref[...])


def rgin_conv(x, adj, params):
    N, Fin = x.shape
    R = adj.shape[0]
    Fout = params["w_sl"].shape[1]

    # Pad targets: 128 keeps toy shapes small; use 256 for large realistic
    # N / Fout on v6e / v7x (256-deep bf16 MXU).
    LANE = 128
    Fin_p = _round_up(Fin, LANE)
    Fout_p = _round_up(Fout, LANE)
    Nk_p = _round_up(N, LANE)                 # aggregation contraction (src) dim

    # Lane-/K-pad and cast heavy operands to bf16 in the XLA wrapper.
    x_p = _pad_to(x, (Nk_p, Fin_p)).astype(jnp.bfloat16)
    adj_p = _pad_to(adj, (R, N, Nk_p)).astype(jnp.bfloat16)
    wsl = _pad_to(params["w_sl"], (Fin_p, Fout_p)).astype(jnp.bfloat16)
    bsl = _pad_to(params["b_sl"], (1, Fout_p)).astype(jnp.float32)
    w1 = _pad_to(params["w1"], (R, Fin_p, Fout_p)).astype(jnp.bfloat16)
    b1 = _pad_to(params["b1"], (R, 1, Fout_p)).astype(jnp.float32)
    gamma = _pad_to(params["gamma"], (R, 1, Fout_p)).astype(jnp.float32)
    beta = _pad_to(params["beta"], (R, 1, Fout_p)).astype(jnp.float32)
    w2 = _pad_to(params["w2"], (R, Fout_p, Fout_p)).astype(jnp.bfloat16)
    b2 = _pad_to(params["b2"], (R, 1, Fout_p)).astype(jnp.float32)

    # Per-step VMEM block footprint (bytes); x2 for double buffering, + margin.
    blk = (N * Nk_p * 2                        # adj[r]
           + Nk_p * Fin_p * 2                  # x
           + Fin_p * Fout_p * 2 + Fout_p * 4   # W_sl, b_sl
           + Fin_p * Fout_p * 2                # W1[r]
           + 3 * (Fout_p * 4)                  # b1, gamma, beta
           + Fout_p * Fout_p * 2 + Fout_p * 4  # W2[r], b2
           + N * Fout_p * 4)                   # out slab
    vmem_limit = int(min(max(2 * blk + (4 << 20), 8 << 20), 48 << 20))

    out_rel = pl.pallas_call(
        rgin_kernel,
        out_shape=jax.ShapeDtypeStruct((R, N, Fout_p), jnp.float32),
        grid_spec=pltpu.PrefetchScalarGridSpec(
            num_scalar_prefetch=0,
            grid=(R,),
            in_specs=[
                pl.BlockSpec((None, N, Nk_p),        lambda r: (r, 0, 0)),  # adj[r]
                pl.BlockSpec((Nk_p, Fin_p),          lambda r: (0, 0)),     # x
                pl.BlockSpec((Fin_p, Fout_p),        lambda r: (0, 0)),     # W_sl
                pl.BlockSpec((1, Fout_p),            lambda r: (0, 0)),     # b_sl
                pl.BlockSpec((None, Fin_p, Fout_p),  lambda r: (r, 0, 0)),  # W1[r]
                pl.BlockSpec((None, 1, Fout_p),      lambda r: (r, 0, 0)),  # b1[r]
                pl.BlockSpec((None, 1, Fout_p),      lambda r: (r, 0, 0)),  # gamma[r]
                pl.BlockSpec((None, 1, Fout_p),      lambda r: (r, 0, 0)),  # beta[r]
                pl.BlockSpec((None, Fout_p, Fout_p), lambda r: (r, 0, 0)),  # W2[r]
                pl.BlockSpec((None, 1, Fout_p),      lambda r: (r, 0, 0)),  # b2[r]
            ],
            out_specs=pl.BlockSpec((None, N, Fout_p), lambda r: (r, 0, 0)),
        ),
        compiler_params=pltpu.CompilerParams(
            dimension_semantics=("parallel",),
            vmem_limit_bytes=vmem_limit),
    )(adj_p, x_p, wsl, bsl, w1, b1, gamma, beta, w2, b2)

    # Sum per-relation slabs (self-loop is folded into slab 0); drop lane pad.
    return jnp.sum(out_rel, axis=0)[:, :Fout]


def build_adjacency(edge_index, edge_type, num_nodes, num_relations):
    # A[r, t, s] = number of edges (s -> t) with relation r   (glue, plain JAX)
    src, dst = edge_index[0], edge_index[1]
    adj = jnp.zeros((num_relations, num_nodes, num_nodes), jnp.float32)
    return adj.at[edge_type, dst, src].add(1.0)


def init_params(key, in_features, out_features, num_relations):
    ks = jax.random.split(key, 8)

    def lin(k, fan_in, shape):
        bound = 1.0 / jnp.sqrt(fan_in)
        return jax.random.uniform(k, shape, jnp.float32, -bound, bound)

    R, Fin, Fout = num_relations, in_features, out_features
    return {
        # weights stored pre-transposed to (in, out) so the kernel does x @ W
        "w_sl": lin(ks[0], Fin, (Fin, Fout)),
        "b_sl": lin(ks[1], Fin, (1, Fout)),
        "w1":   lin(ks[2], Fin, (R, Fin, Fout)),
        "b1":   lin(ks[3], Fin, (R, 1, Fout)),
        "gamma": jnp.ones((R, 1, Fout), jnp.float32),
        "beta":  jnp.zeros((R, 1, Fout), jnp.float32),
        "w2":   lin(ks[4], Fout, (R, Fout, Fout)),
        "b2":   lin(ks[5], Fout, (R, 1, Fout)),
    }


def rgin_reference(x, adj, params):
    # Mirrors the kernel numerics (bf16 matmul operands, f32 accumulation,
    # two-pass folded BatchNorm) so the comparison isolates kernel correctness.
    R = adj.shape[0]
    xb = x.astype(jnp.bfloat16)
    xf = xb.astype(jnp.float32)
    out = (jnp.dot(xb, params["w_sl"].astype(jnp.bfloat16),
                   preferred_element_type=jnp.float32) + params["b_sl"])
    for r in range(R):
        agg = jnp.dot(adj[r].astype(jnp.bfloat16), xb,
                      preferred_element_type=jnp.float32)
        h = (xf + agg).astype(jnp.bfloat16)
        z = (jnp.dot(h, params["w1"][r].astype(jnp.bfloat16),
                     preferred_element_type=jnp.float32) + params["b1"][r])
        mu = jnp.mean(z, axis=0, keepdims=True)
        zc = z - mu
        var = jnp.mean(zc * zc, axis=0, keepdims=True)
        scale = params["gamma"][r] * lax.rsqrt(var + 1e-5)
        a = jnp.maximum(zc * scale + params["beta"][r], 0.0)
        out = out + (jnp.dot(a.astype(jnp.bfloat16),
                             params["w2"][r].astype(jnp.bfloat16),
                             preferred_element_type=jnp.float32)
                     + params["b2"][r])
    return out


if __name__ == "__main__":
    N, Fin, Fout, R, E = 32, 16, 32, 3, 64

    key = jax.random.PRNGKey(0)
    k_x, k_src, k_dst, k_type, k_par = jax.random.split(key, 5)

    x = jax.random.normal(k_x, (N, Fin), jnp.float32)
    edge_index = jnp.stack([
        jax.random.randint(k_src, (E,), 0, N, jnp.int32),
        jax.random.randint(k_dst, (E,), 0, N, jnp.int32),
    ])                                                     # (2, E)
    edge_type = jax.random.randint(k_type, (E,), 0, R, jnp.int32)   # (E,)

    params = init_params(k_par, Fin, Fout, R)
    adj = build_adjacency(edge_index, edge_type, N, R)

    out = rgin_conv(x, adj, params)
    out = jax.block_until_ready(out)

    ref = rgin_reference(x, adj, params)
    assert out.shape == (N, Fout)
    assert jnp.allclose(out, ref, rtol=1e-2, atol=1e-2), "mismatch vs reference"

    print("KERNEL_OK")
</pallas_src>

<mosaic_0001>
module attributes {stable_mosaic.version = 11 : i64} {
  func.func @rgin_kernel(%arg0: i32, %arg1: memref<1x32x128xbf16, #tpu.memory_space<vmem>>, %arg2: memref<128x128xbf16, #tpu.memory_space<vmem>>, %arg3: memref<128x128xbf16, #tpu.memory_space<vmem>>, %arg4: memref<1x128xf32, #tpu.memory_space<vmem>>, %arg5: memref<1x128x128xbf16, #tpu.memory_space<vmem>>, %arg6: memref<1x1x128xf32, #tpu.memory_space<vmem>>, %arg7: memref<1x1x128xf32, #tpu.memory_space<vmem>>, %arg8: memref<1x1x128xf32, #tpu.memory_space<vmem>>, %arg9: memref<1x128x128xbf16, #tpu.memory_space<vmem>>, %arg10: memref<1x1x128xf32, #tpu.memory_space<vmem>>, %arg11: memref<1x32x128xf32, #tpu.memory_space<vmem>>) attributes {dimension_semantics = [#tpu.dimension_semantics<parallel>], iteration_bounds = array<i64: 3>, scalar_prefetch = 0 : i64, scratch_operands = 0 : i64, tpu.core_type = #tpu.core_type<tc>, window_params = [{transform_indices = @transform_0, window_bounds = array<i64: 1, 32, 128>}, {pipeline_mode = #tpu.pipeline_mode<synchronous>, transform_indices = @transform_1, window_bounds = array<i64: 128, 128>}, {pipeline_mode = #tpu.pipeline_mode<synchronous>, transform_indices = @transform_2, window_bounds = array<i64: 128, 128>}, {pipeline_mode = #tpu.pipeline_mode<synchronous>, transform_indices = @transform_3, window_bounds = array<i64: 1, 128>}, {transform_indices = @transform_4, window_bounds = array<i64: 1, 128, 128>}, {transform_indices = @transform_5, window_bounds = array<i64: 1, 1, 128>}, {transform_indices = @transform_6, window_bounds = array<i64: 1, 1, 128>}, {transform_indices = @transform_7, window_bounds = array<i64: 1, 1, 128>}, {transform_indices = @transform_8, window_bounds = array<i64: 1, 128, 128>}, {transform_indices = @transform_9, window_bounds = array<i64: 1, 1, 128>}, {transform_indices = @transform_10, window_bounds = array<i64: 1, 32, 128>}]} {
    %c0 = arith.constant 0 : index
    %c0_0 = arith.constant 0 : index
    %0 = vector.load %arg2[%c0, %c0_0] : memref<128x128xbf16, #tpu.memory_space<vmem>>, vector<128x128xbf16>
    %1 = vector.extract_strided_slice %0 {offsets = [0, 0], sizes = [32, 128], strides = [1, 1]} : vector<128x128xbf16> to vector<32x128xbf16>
    %2 = arith.extf %1 : vector<32x128xbf16> to vector<32x128xf32>
    %c0_1 = arith.constant 0 : index
    %c0_2 = arith.constant 0 : index
    %c0_3 = arith.constant 0 : index
    %3 = vector.load %arg1[%c0_1, %c0_2, %c0_3] : memref<1x32x128xbf16, #tpu.memory_space<vmem>>, vector<1x32x128xbf16>
    %4 = vector.shape_cast %3 : vector<1x32x128xbf16> to vector<32x128xbf16>
    %cst = arith.constant dense<0.000000e+00> : vector<32x128xf32>
    %5 = tpu.matmul %4, %0, %cst {dimension_numbers = #tpu.dot_dimension_numbers<[1], [0], [0], [1], [0, 0, 1, 1], [], []>} : vector<32x128xbf16>, vector<128x128xbf16>, vector<32x128xf32> -> vector<32x128xf32>
    %6 = arith.addf %2, %5 : vector<32x128xf32>
    %7 = arith.truncf %6 : vector<32x128xf32> to vector<32x128xbf16>
    %c0_4 = arith.constant 0 : index
    %c0_5 = arith.constant 0 : index
    %c0_6 = arith.constant 0 : index
    %8 = vector.load %arg5[%c0_4, %c0_5, %c0_6] : memref<1x128x128xbf16, #tpu.memory_space<vmem>>, vector<1x128x128xbf16>
    %9 = vector.shape_cast %8 : vector<1x128x128xbf16> to vector<128x128xbf16>
    %cst_7 = arith.constant dense<0.000000e+00> : vector<32x128xf32>
    %10 = tpu.matmul %7, %9, %cst_7 {dimension_numbers = #tpu.dot_dimension_numbers<[1], [0], [0], [1], [0, 0, 1, 1], [], []>} : vector<32x128xbf16>, vector<128x128xbf16>, vector<32x128xf32> -> vector<32x128xf32>
    %c0_8 = arith.constant 0 : index
    %c0_9 = arith.constant 0 : index
    %c0_10 = arith.constant 0 : index
    %11 = vector.load %arg6[%c0_8, %c0_9, %c0_10] : memref<1x1x128xf32, #tpu.memory_space<vmem>>, vector<1x1x128xf32>
    %12 = vector.shape_cast %11 : vector<1x1x128xf32> to vector<1x128xf32>
    %13 = vector.broadcast %12 : vector<1x128xf32> to vector<32x128xf32>
    %14 = arith.addf %10, %13 : vector<32x128xf32>
    %cst_11 = arith.constant dense<0.000000e+00> : vector<128xf32>
    %15 = vector.multi_reduction <add>, %14, %cst_11 [0] : vector<32x128xf32> to vector<128xf32>
    %16 = vector.shape_cast %15 : vector<128xf32> to vector<1x128xf32>
    %cst_12 = arith.constant 3.125000e-02 : f32
    %17 = vector.broadcast %cst_12 : f32 to vector<1x128xf32>
    %18 = arith.mulf %16, %17 : vector<1x128xf32>
    %19 = vector.broadcast %18 : vector<1x128xf32> to vector<32x128xf32>
    %20 = arith.subf %14, %19 : vector<32x128xf32>
    %21 = arith.mulf %20, %20 : vector<32x128xf32>
    %cst_13 = arith.constant dense<0.000000e+00> : vector<128xf32>
    %22 = vector.multi_reduction <add>, %21, %cst_13 [0] : vector<32x128xf32> to vector<128xf32>
    %23 = vector.shape_cast %22 : vector<128xf32> to vector<1x128xf32>
    %cst_14 = arith.constant 3.125000e-02 : f32
    %24 = vector.broadcast %cst_14 : f32 to vector<1x128xf32>
    %25 = arith.mulf %23, %24 : vector<1x128xf32>
    %c0_15 = arith.constant 0 : index
    %c0_16 = arith.constant 0 : index
    %c0_17 = arith.constant 0 : index
    %26 = vector.load %arg7[%c0_15, %c0_16, %c0_17] : memref<1x1x128xf32, #tpu.memory_space<vmem>>, vector<1x1x128xf32>
    %27 = vector.shape_cast %26 : vector<1x1x128xf32> to vector<1x128xf32>
    %cst_18 = arith.constant 9.99999974E-6 : f32
    %28 = vector.broadcast %cst_18 : f32 to vector<1x128xf32>
    %29 = arith.addf %25, %28 : vector<1x128xf32>
    %30 = math.rsqrt %29 : vector<1x128xf32>
    %31 = arith.mulf %27, %30 : vector<1x128xf32>
    %32 = vector.broadcast %31 : vector<1x128xf32> to vector<32x128xf32>
    %33 = arith.mulf %20, %32 : vector<32x128xf32>
    %c0_19 = arith.constant 0 : index
    %c0_20 = arith.constant 0 : index
    %c0_21 = arith.constant 0 : index
    %34 = vector.load %arg8[%c0_19, %c0_20, %c0_21] : memref<1x1x128xf32, #tpu.memory_space<vmem>>, vector<1x1x128xf32>
    %35 = vector.shape_cast %34 : vector<1x1x128xf32> to vector<1x128xf32>
    %36 = vector.broadcast %35 : vector<1x128xf32> to vector<32x128xf32>
    %37 = arith.addf %33, %36 : vector<32x128xf32>
    %cst_22 = arith.constant 0.000000e+00 : f32
    %38 = vector.broadcast %cst_22 : f32 to vector<32x128xf32>
    %39 = arith.maximumf %37, %38 : vector<32x128xf32>
    %40 = arith.truncf %39 : vector<32x128xf32> to vector<32x128xbf16>
    %c0_23 = arith.constant 0 : index
    %c0_24 = arith.constant 0 : index
    %c0_25 = arith.constant 0 : index
    %41 = vector.load %arg9[%c0_23, %c0_24, %c0_25] : memref<1x128x128xbf16, #tpu.memory_space<vmem>>, vector<1x128x128xbf16>
    %42 = vector.shape_cast %41 : vector<1x128x128xbf16> to vector<128x128xbf16>
    %cst_26 = arith.constant dense<0.000000e+00> : vector<32x128xf32>
    %43 = tpu.matmul %40, %42, %cst_26 {dimension_numbers = #tpu.dot_dimension_numbers<[1], [0], [0], [1], [0, 0, 1, 1], [], []>} : vector<32x128xbf16>, vector<128x128xbf16>, vector<32x128xf32> -> vector<32x128xf32>
    %c0_27 = arith.constant 0 : index
    %c0_28 = arith.constant 0 : index
    %c0_29 = arith.constant 0 : index
    %44 = vector.load %arg10[%c0_27, %c0_28, %c0_29] : memref<1x1x128xf32, #tpu.memory_space<vmem>>, vector<1x1x128xf32>
    %45 = vector.shape_cast %44 : vector<1x1x128xf32> to vector<1x128xf32>
    %46 = vector.broadcast %45 : vector<1x128xf32> to vector<32x128xf32>
    %47 = arith.addf %43, %46 : vector<32x128xf32>
    %c0_30 = arith.constant 0 : index
    %c0_31 = arith.constant 0 : index
    %c0_32 = arith.constant 0 : index
    %48 = vector.load %arg11[%c0_30, %c0_31, %c0_32] : memref<1x32x128xf32, #tpu.memory_space<vmem>>, vector<1x32x128xf32>
    %49 = vector.shape_cast %48 : vector<1x32x128xf32> to vector<32x128xf32>
    %50 = vector.shape_cast %47 : vector<32x128xf32> to vector<1x32x128xf32>
    tpu.vector_store %arg11[%c0_30, %c0_31, %c0_32], %50 {strides = array<i32>} : memref<1x32x128xf32, #tpu.memory_space<vmem>>, vector<1x32x128xf32>,
    %c0_i32 = arith.constant 0 : i32
    %51 = arith.cmpi eq, %arg0, %c0_i32 : i32
    %52 = arith.extui %51 : i1 to i32
    %c0_i32_33 = arith.constant 0 : i32
    %53 = arith.cmpi ne, %52, %c0_i32_33 : i32
    scf.if %53 {
      %c0_34 = arith.constant 0 : index
      %c0_35 = arith.constant 0 : index
      %c0_36 = arith.constant 0 : index
      %54 = vector.load %arg11[%c0_34, %c0_35, %c0_36] : memref<1x32x128xf32, #tpu.memory_space<vmem>>, vector<1x32x128xf32>
      %55 = vector.shape_cast %54 : vector<1x32x128xf32> to vector<32x128xf32>
      %c0_37 = arith.constant 0 : index
      %c0_38 = arith.constant 0 : index
      %56 = vector.load %arg3[%c0_37, %c0_38] : memref<128x128xbf16, #tpu.memory_space<vmem>>, vector<128x128xbf16>
      %cst_39 = arith.constant dense<0.000000e+00> : vector<32x128xf32>
      %57 = tpu.matmul %1, %56, %cst_39 {dimension_numbers = #tpu.dot_dimension_numbers<[1], [0], [0], [1], [0, 0, 1, 1], [], []>} : vector<32x128xbf16>, vector<128x128xbf16>, vector<32x128xf32> -> vector<32x128xf32>
      %c0_40 = arith.constant 0 : index
      %c0_41 = arith.constant 0 : index
      %58 = vector.load %arg4[%c0_40, %c0_41] : memref<1x128xf32, #tpu.memory_space<vmem>>, vector<1x128xf32>
      %59 = vector.broadcast %58 : vector<1x128xf32> to vector<32x128xf32>
      %60 = arith.addf %57, %59 : vector<32x128xf32>
      %61 = arith.addf %55, %60 : vector<32x128xf32>
      %c0_42 = arith.constant 0 : index
      %c0_43 = arith.constant 0 : index
      %c0_44 = arith.constant 0 : index
      %62 = vector.load %arg11[%c0_42, %c0_43, %c0_44] : memref<1x32x128xf32, #tpu.memory_space<vmem>>, vector<1x32x128xf32>
      %63 = vector.shape_cast %62 : vector<1x32x128xf32> to vector<32x128xf32>
      %64 = vector.shape_cast %61 : vector<32x128xf32> to vector<1x32x128xf32>
      tpu.vector_store %arg11[%c0_42, %c0_43, %c0_44], %64 {strides = array<i32>} : memref<1x32x128xf32, #tpu.memory_space<vmem>>, vector<1x32x128xf32>,
    } else {
    }
    return
  }
  func.func @transform_0(%arg0: i32) -> (i32, i32, i32) {
    %c0_i32 = arith.constant 0 : i32
    %c0_i32_0 = arith.constant 0 : i32
    %c0_i32_1 = arith.constant 0 : i32
    return %arg0, %c0_i32, %c0_i32_0 : i32, i32, i32
  }
  func.func @transform_1(%arg0: i32) -> (i32, i32) {
    %c0_i32 = arith.constant 0 : i32
    %c0_i32_0 = arith.constant 0 : i32
    %c0_i32_1 = arith.constant 0 : i32
    return %c0_i32, %c0_i32_0 : i32, i32
  }
  func.func @transform_2(%arg0: i32) -> (i32, i32) {
    %c0_i32 = arith.constant 0 : i32
    %c0_i32_0 = arith.constant 0 : i32
    %c0_i32_1 = arith.constant 0 : i32
    return %c0_i32, %c0_i32_0 : i32, i32
  }
  func.func @transform_3(%arg0: i32) -> (i32, i32) {
    %c0_i32 = arith.constant 0 : i32
    %c0_i32_0 = arith.constant 0 : i32
    %c0_i32_1 = arith.constant 0 : i32
    return %c0_i32, %c0_i32_0 : i32, i32
  }
  func.func @transform_4(%arg0: i32) -> (i32, i32, i32) {
    %c0_i32 = arith.constant 0 : i32
    %c0_i32_0 = arith.constant 0 : i32
    %c0_i32_1 = arith.constant 0 : i32
    return %arg0, %c0_i32, %c0_i32_0 : i32, i32, i32
  }
  func.func @transform_5(%arg0: i32) -> (i32, i32, i32) {
    %c0_i32 = arith.constant 0 : i32
    %c0_i32_0 = arith.constant 0 : i32
    %c0_i32_1 = arith.constant 0 : i32
    return %arg0, %c0_i32, %c0_i32_0 : i32, i32, i32
  }
  func.func @transform_6(%arg0: i32) -> (i32, i32, i32) {
    %c0_i32 = arith.constant 0 : i32
    %c0_i32_0 = arith.constant 0 : i32
    %c0_i32_1 = arith.constant 0 : i32
    return %arg0, %c0_i32, %c0_i32_0 : i32, i32, i32
  }
  func.func @transform_7(%arg0: i32) -> (i32, i32, i32) {
    %c0_i32 = arith.constant 0 : i32
    %c0_i32_0 = arith.constant 0 : i32
    %c0_i32_1 = arith.constant 0 : i32
    return %arg0, %c0_i32, %c0_i32_0 : i32, i32, i32
  }
  func.func @transform_8(%arg0: i32) -> (i32, i32, i32) {
    %c0_i32 = arith.constant 0 : i32
    %c0_i32_0 = arith.constant 0 : i32
    %c0_i32_1 = arith.constant 0 : i32
    return %arg0, %c0_i32, %c0_i32_0 : i32, i32, i32
  }
  func.func @transform_9(%arg0: i32) -> (i32, i32, i32) {
    %c0_i32 = arith.constant 0 : i32
    %c0_i32_0 = arith.constant 0 : i32
    %c0_i32_1 = arith.constant 0 : i32
    return %arg0, %c0_i32, %c0_i32_0 : i32, i32, i32
  }
  func.func @transform_10(%arg0: i32) -> (i32, i32, i32) {
    %c0_i32 = arith.constant 0 : i32
    %c0_i32_0 = arith.constant 0 : i32
    %c0_i32_1 = arith.constant 0 : i32
    return %arg0, %c0_i32, %c0_i32_0 : i32, i32, i32
  }
}

</mosaic_0001>

<bundles_post_ra>
// kernel: tpu_custom_call.1
= control target key start
LH: loop header
LB: loop body
LE: loop exit
PB: predicated region body
PF: predicated region fallthrough
CT: control target
= control target key end

     0   :  { %s2294_s0 = inlined_call_operand.hbm [shape: bf16[3,32,128], index: 0, kind: input, shape index: {}]   ;;  %s2295_s1 = inlined_call_operand.hbm [shape: bf16[128,128], index: 1, kind: input, shape index: {}]   ;;  %s2296_s2 = inlined_call_operand.hbm [shape: bf16[128,128], index: 2, kind: input, shape index: {}]   ;;  %s2297_s3 = inlined_call_operand.vmem [shape: f32[1,128], index: 3, kind: input, shape index: {}]   ;;  %s2298_s4 = inlined_call_operand.hbm [shape: bf16[3,128,128], index: 4, kind: input, shape index: {}]   ;;  %s2299_s5 = inlined_call_operand.vmem [shape: f32[3,1,128], index: 5, kind: input, shape index: {}]   ;;  %s2300_s6 = inlined_call_operand.vmem [shape: f32[3,1,128], index: 6, kind: input, shape index: {}]   ;;  %s2301_s7 = inlined_call_operand.vmem [shape: f32[3,1,128], index: 7, kind: input, shape index: {}]   ;;  %s2302_s8 = inlined_call_operand.hbm [shape: bf16[3,128,128], index: 8, kind: input, shape index: {}]   ;;  %s2303_s9 = inlined_call_operand.vmem [shape: f32[3,1,128], index: 9, kind: input, shape index: {}]   ;;  %s2304_s10 = inlined_call_operand.hbm [shape: f32[3,32,128], index: 10, kind: output, shape index: {}]  }
   0x1   :  { %2328 = sst [smem:[#allocation22_spill]] %s2295_s1 }
   0x2   :  { %2329 = sst [smem:[#allocation23_spill]] %s2297_s3 }
   0x3   :  { %2330 = sst [smem:[#allocation24_spill]] %s2298_s4 }
   0x4   :  { %2331 = sst [smem:[#allocation25_spill]] %s2300_s6 }
   0x5   :  { %2332 = sst [smem:[#allocation26_spill]] %s2301_s7 }
   0x6   :  { %2333 = sst [smem:[#allocation27_spill]] %s2303_s9 }
   0x7   :  { %2334 = sst [smem:[#allocation28_spill]] %s2304_s10 }
   0x8   :  { %15 = vsyncpa [#allocation3], 0 }
   0x9   :  { %17 = vsyncpa [#allocation3 + $0x1], 0 }
   0xa   :  { %18 = vsyncpa [#allocation6], 0 }
   0xb   :  { %19 = vsyncpa [#allocation9], 0 }
   0xc   :  { %21 = vsyncpa [#allocation9 + $0x1], 0 }
   0xd   :  { %22 = vsyncpa [#allocation4], 0 }
   0xe   :  { %24 = vsyncpa [#allocation4 + $0x1], 0  ;;  %s1899_s13 = smov 0   ;;  %s1901_s14 = smov 0  }
   0xf   :  { %s1903_s15 = smov 0   ;;  %s1905_s16 = smov 0  }
  0x10 LB: > { %2335 = sst [smem:[#allocation16_spill]] %s1820_s13  ;;  %s1920_s17 = sadd.s32 4294967295, %s1832_s16   ;;  %s1832_s16 = sphi %s1905_s16, %s2376_s16   ;;  %s1828_s15 = sphi %s1903_s15, %s2378_s15   ;;  %s1824_s14 = sphi %s1901_s14, %s2380_s14   ;;  %s1820_s13 = sphi %s1899_s13, %s2379_s13  }
  0x11   : > { %2336 = sst [smem:[#allocation17_spill]] %s1828_s15  ;;  %s1304_s18 = sadd.s32 4294967294, %s1832_s16  }
  0x12   : > { %s1924_s19 = sadd.s32 1, %s1832_s16   ;;  %s37_s20 = sadd.s32 1, %s1828_s15 }
  0x13   : > { %2337 = sst [smem:[#allocation18_spill]] %s1924_s19  ;;  %s34_s21 = ssub.s32 %s1832_s16, %s1924_s19 }
  0x14   : > { %p44_p0 = scmp.ne.s32.totalorder %s1828_s15, %s1824_s14  ;;  %p35_p1 = scmp.eq.s32.totalorder %s34_s21, 0 }
  0x15   : > { %p45_p2 = scmp.eq.s32.totalorder %s1832_s16, 0  ;;  %p50_p3 = scmp.ne.s32.totalorder %s1824_s14, %s1820_s13 }
  0x16   : > { %p2309_p4 = scmp.eq.s32.totalorder %s1920_s17, 0  ;;  %p293_p7 = scmp.eq.s32.totalorder %s1920_s17, 2 }
  0x17   : > { %s1936_s22 = scalar_select %p35_p1, %s1828_s15, %s37_s20  }
  0x18   : > { %p1938_p5 = por %p45_p2, %p44_p0  ;;  %p1944_p6 = por %p2309_p4, %p50_p3 }
  0x19   : > { %2338 = sst [smem:[#allocation19_spill]] %s1936_s22  ;;  %p299_p8 = scmp.eq.s32.totalorder %s1304_s18, 2 }
  0x1a   : > { %s2339_s23 = scalar_select %p1938_p5, 1, 0 }
  0x1b   : > { %s2340_s24 = scalar_select %p1944_p6, 1, 0 }
  0x1c   : > { %p1305_p9 = scmp.ge.s32.totalorder %s1832_s16, 1  ;;  %p306_p10 = scmp.lt.s32.totalorder %s1832_s16, 4 }
  0x1d   : > { %p1951_p11 = por %p293_p7, %p44_p0  ;;  %p1955_p12 = por %p299_p8, %p50_p3 }
  0x1e   : > { %p1959_p13 = pnand %p1305_p9, %p306_p10  ;;  %s1834_s28 = smov [#allocation5]  }
  0x1f   : > { %s2341_s25 = scalar_select %p1951_p11, 1, 0 }
  0x20   : > { %s2343_s26 = scalar_select %p1955_p12, 1, 0 }
  0x21   : > { %2342 = sst [smem:[#allocation20_spill]] %s2341_s25  ;;  %p1509_p2 = pneg %p1959_p13 }
  0x22   : > { %2344 = sst [smem:[#allocation21_spill]] %s2343_s26  ;;  %s318_s29 = sshll.u32 %s1834_s28, 4  ;;  %s319_s29 = int_to_ptr.vmem [resolvable:$true] %s318_s29 }
  0x23   : > { %s2345_s27 = scalar_select %p1959_p13, 1, 0 }
  0x24   : > { %p1968_p0 = pnand %p1509_p2, %p2309_p4  ;;  %s1974_s11 = sand.u32 1, %s1828_s15  }
  0x25   : > { %s369_s12 = sand.u32 1, %s1832_s16   ;;  %s2347_s1 = sld [smem:[#allocation22_spill]] }
  0x26   : > { %s2346_s30 = scalar_select %p1968_p0, 1, 0 }
  0x27   : > { %p2319_p8 = pneg %p1968_p0 }
  0x2b   : > { %s1612_s21 = scalar_lea.hbm %s2347_s1, 1024 }
  0x2c   : > { %p1613_p7 = scmp.ne.s32.totalorder %s2347_s1, %s1612_s21  ;;  %p1619_p2 = scmp.lt.u32.totalorder %s1612_s21, %s2347_s1 }
  0x2e   : > { %p1615_p9 = pnand %p2319_p8, %p1613_p7 }
  0x30   : > { %p1616_p10 = pneg %p1615_p9 }
  0x32   : > { %p1621_p1 = pnand %p1619_p2, %p1616_p10 }
  0x34   : > { %1624 = shalt.err (!%p1621_p1)
}
  0x35   : > { %s1625_s15 = scalar_lea.vmem %s319_s29, 1024  ;;  %p1633_p11 = scmp.lt.s32.totalorder %s319_s29, %s319_s29 }
  0x36   : > { %p1626_p4 = scmp.ne.s32.totalorder %s319_s29, %s1625_s15  ;;  %p1634_p6 = scmp.lt.s32.totalorder %s1625_s15, %s1625_s15 }
  0x38   : > { %p1628_p3 = pnand %p1626_p4, %p2319_p8  ;;  %p1635_p13 = por %p1634_p6, %p1633_p11 }
  0x3a   : > { %p1629_p12 = pneg %p1628_p3 }
  0x3c   : > { %p1636_p5 = pnand %p1635_p13, %p1629_p12 }
  0x3e   : > { %1639 = shalt.err (!%p1636_p5)
}
  0x3f   : > { %s2315_s19 = smov 64   ;;  %s1836_s22 = smov 4  }
  0x40   : > { %1512 = dma.hbm_to_vmem [thread:$0]  (!%p1968_p0), %s2347_s1, 1024, %s319_s29, [#allocation6], %s2315_s19, %s2315_s19, %s1836_s22  }
  0x41   : > { %p2348_p4 = scmp.ne.s32.totalorder %s2339_s23, 0  ;;  %p2349_p6 = scmp.lt.s32.totalorder %s1832_s16, 3 }
  0x42   : > { %s2317_s20 = sshll.u32 %s1974_s11, 6  ;;  %s2318_s21 = sshll.u32 %s1832_s16, 10 }
  0x43   : > { %p2006_p5 = pnand %p2349_p6, %p2348_p4  ;;  %s2351_s4 = sld [smem:[#allocation24_spill]] }
  0x44   : > { %s373_s23 = scalar_lea.vmem [#allocation8], %s2317_s20  ;;  %s2023_s26 = scalar_lea.sflag [#allocation9], %s369_s12 }
  0x45   : > { %s2350_s15 = scalar_select %p2006_p5, 1, 0 }
  0x46   : > { %s380_s29 = sshll.u32 %s373_s23, 4  ;;  %p2029_p12 = pneg %p2006_p5  ;;  %s2021_s29 = int_to_ptr.vmem [resolvable:$true] %s380_s29 }
  0x48   : > { %s2352_s19 = scalar_select %p2029_p12, 1, 0 }
  0x49   : > { %s2017_s10 = scalar_lea.hbm %s2351_s4, %s2318_s21  ;;  %s1645_s20 = scalar_lea.hbm %s2351_s4, 3072 }
  0x4a   : > { %s1640_s18 = scalar_lea.hbm %s2017_s10, 1024  ;;  %p1646_p3 = scmp.lt.u32.totalorder %s2017_s10, %s2351_s4 }
  0x4b   : > { %p1641_p11 = scmp.ne.s32.totalorder %s2017_s10, %s1640_s18  ;;  %p1647_p7 = scmp.lt.u32.totalorder %s1645_s20, %s1640_s18 }
  0x4c   : > { %p1649_p10 = scmp.lt.u32.totalorder %s1640_s18, %s2017_s10 }
  0x4d   : > { %p1643_p13 = pnand %p2029_p12, %p1641_p11  ;;  %p1648_p9 = por %p1647_p7, %p1646_p3 }
  0x4f   : > { %p1644_p1 = pneg %p1643_p13  ;;  %p1650_p2 = por %p1649_p10, %p1648_p9 }
  0x51   : > { %p1651_p4 = pnand %p1650_p2, %p1644_p1 }
  0x53   : > { %1654 = shalt.err (!%p1651_p4)
}
  0x54   : > { %s1655_s12 = scalar_lea.vmem %s2021_s29, 1024  ;;  %s1837_s13 = smov [#allocation8]  }
  0x55   : > { %p1656_p6 = scmp.ne.s32.totalorder %s2021_s29, %s1655_s12  ;;  %s1660_s28 = sshll.u32 %s1837_s13, 4  ;;  %s1661_s28 = int_to_ptr.vmem [resolvable:$false] %s1660_s28 }
  0x56   : > { %s1662_s21 = scalar_lea.vmem %s1661_s28, 2048  ;;  %p1663_p8 = scmp.lt.s32.totalorder %s2021_s29, %s1661_s28 }
  0x57   : > { %p1658_p11 = pnand %p1656_p6, %p2029_p12  ;;  %p1664_p0 = scmp.lt.s32.totalorder %s1662_s21, %s1655_s12 }
  0x59   : > { %p1659_p13 = pneg %p1658_p11  ;;  %p1665_p3 = por %p1664_p0, %p1663_p8 }
  0x5b   : > { %p1666_p7 = pnand %p1665_p3, %p1659_p13 }
  0x5d   : > { %1669 = shalt.err (!%p1666_p7)
}
  0x5e   : > { %s2353_s20 = smov 64   ;;  %s2354_s18 = sshll.u32 %s1832_s16, 10 }
  0x5f   : > { %1522 = dma.hbm_to_vmem [thread:$0]  (!%p2006_p5), %s2017_s10, 1024, %s2021_s29, %s2023_s26, %s2353_s20, %s2353_s20, %s1836_s22  }
  0x60   : > { %s2061_s12 = scalar_lea.hbm %s2302_s8, %s2354_s18  ;;  %s2355_s28 = sshll.u32 %s1974_s11, 6 }
  0x61   : > { %s412_s21 = scalar_lea.vmem [#allocation10], %s2355_s28  ;;  %s1838_s4 = smov [#allocation7]  }
  0x62   : > { %s419_s1 = sshll.u32 %s412_s21, 4  ;;  %s331_s25 = sshll.u32 %s1838_s4, 4  ;;  %s2065_s1 = int_to_ptr.vmem [resolvable:$true] %s419_s1  ;;  %s332_s25 = int_to_ptr.vmem [resolvable:$true] %s331_s25 }
  0x63   : > { %s1309_s3 = sshll.u32 %s1974_s11, 4  ;;  %s1670_s6 = scalar_lea.hbm %s2296_s2, 1024 }
  0x64   : > { %p1671_p0 = scmp.ne.s32.totalorder %s2296_s2, %s1670_s6  ;;  %p2356_p8 = scmp.ne.s32.totalorder %s2346_s30, 0 }
  0x65   : > { %p1677_p2 = scmp.lt.u32.totalorder %s1670_s6, %s2296_s2 }
  0x66   : > { %p2357_p1 = pneg %p2356_p8 }
  0x68   : > { %p1673_p9 = pnand %p1671_p0, %p2357_p1 }
  0x6a   : > { %p1674_p10 = pneg %p1673_p9 }
  0x6c   : > { %p1679_p4 = pnand %p1677_p2, %p1674_p10 }
  0x6e   : > { %1682 = shalt.err (!%p1679_p4)
}
  0x6f   : > { %s1683_s4 = scalar_lea.vmem %s332_s25, 1024  ;;  %p2358_p11 = pmov %p2357_p1 }
  0x70   : > { %p1684_p6 = scmp.ne.s32.totalorder %s332_s25, %s1683_s4  ;;  %p1691_p7 = scmp.lt.s32.totalorder %s332_s25, %s332_s25 }
  0x71   : > { %p1692_p5 = scmp.lt.s32.totalorder %s1683_s4, %s1683_s4 }
  0x72   : > { %p1686_p13 = pnand %p1684_p6, %p2358_p11 }
  0x73   : > { %p1693_p12 = por %p1692_p5, %p1691_p7 }
  0x74   : > { %p1687_p3 = pneg %p1686_p13 }
  0x76   : > { %p1694_p0 = pnand %p1693_p12, %p1687_p3 }
  0x78   : > { %1697 = shalt.err (!%p1694_p0)
}
  0x79   : > { %1515 = dma.hbm_to_vmem [thread:$0]  (!%p2356_p8), %s2296_s2, 1024, %s332_s25, [#allocation6], %s2353_s20, %s2353_s20, %s1836_s22  }
  0x7a   : > { %s1369_s9 = sshll.u32 %s1832_s16, 8  ;;  %s352_s30 = scalar_lea.vmem [#allocation2], %s1309_s3 }
  0x7b   : > { %s2095_s21 = scalar_lea.hbm %s2294_s0, %s1369_s9  ;;  %s359_s10 = sshll.u32 %s352_s30, 4  ;;  %s2097_s10 = int_to_ptr.vmem [resolvable:$true] %s359_s10 }
  0x7c   : > { %s349_s29 = scalar_lea.sflag [#allocation3], %s1974_s11  ;;  %s1698_s18 = scalar_lea.hbm %s2095_s21, 256 }
  0x7d   : > { %p1699_p5 = scmp.ne.s32.totalorder %s2095_s21, %s1698_s18  ;;  %p2359_p12 = scmp.ne.s32.totalorder %s2352_s19, 0 }
  0x7e   : > { %s1703_s4 = scalar_lea.hbm %s2294_s0, 768  ;;  %p1704_p9 = scmp.lt.u32.totalorder %s2095_s21, %s2294_s0 }
  0x7f   : > { %p1701_p1 = pnand %p1699_p5, %p2359_p12  ;;  %p1705_p10 = scmp.lt.u32.totalorder %s1703_s4, %s1698_s18 }
  0x80   : > { %p1707_p4 = scmp.lt.u32.totalorder %s1698_s18, %s2095_s21 }
  0x81   : > { %p1702_p8 = pneg %p1701_p1  ;;  %p1706_p2 = por %p1705_p10, %p1704_p9 }
  0x83   : > { %p1708_p6 = por %p1707_p4, %p1706_p2 }
  0x85   : > { %p1709_p11 = pnand %p1708_p6, %p1702_p8 }
  0x87   : > { %1712 = shalt.err (!%p1709_p11)
}
  0x88   : > { %s1713_s3 = scalar_lea.vmem %s2097_s10, 256  ;;  %s1839_s9 = smov [#allocation2]  }
  0x89   : > { %p1714_p13 = scmp.ne.s32.totalorder %s2097_s10, %s1713_s3  ;;  %s1718_s13 = sshll.u32 %s1839_s9, 4  ;;  %s1719_s13 = int_to_ptr.vmem [resolvable:$false] %s1718_s13 }
  0x8a   : > { %s1720_s28 = scalar_lea.vmem %s1719_s13, 512  ;;  %p1721_p0 = scmp.lt.s32.totalorder %s2097_s10, %s1719_s13 }
  0x8b   : > { %p1716_p3 = pnand %p1714_p13, %p2359_p12  ;;  %p1722_p5 = scmp.lt.s32.totalorder %s1720_s28, %s1713_s3 }
  0x8d   : > { %p1717_p7 = pneg %p1716_p3  ;;  %p1723_p1 = por %p1722_p5, %p1721_p0 }
  0x8f   : > { %p1724_p9 = pnand %p1723_p1, %p1717_p7 }
  0x91   : > { %1727 = shalt.err (!%p1724_p9)
}
  0x92   : > { %p2360_p8 = scmp.ne.s32.totalorder %s2350_s15, 0  ;;  %s1728_s30 = scalar_lea.hbm %s2061_s12, 1024 }
  0x93   : > { %p1729_p10 = scmp.ne.s32.totalorder %s2061_s12, %s1728_s30  ;;  %s1733_s23 = scalar_lea.hbm %s2302_s8, 3072 }
  0x94   : > { %1519 = dma.hbm_to_vmem [thread:$0]  (!%p2360_p8), %s2095_s21, 256, %s2097_s10, %s349_s29, %s2353_s20, %s2353_s20, %s1836_s22  }
  0x95   : > { %p1731_p2 = pnand %p1729_p10, %p2359_p12  ;;  %p1734_p6 = scmp.lt.u32.totalorder %s2061_s12, %s2302_s8 }
  0x96   : > { %p1735_p11 = scmp.lt.u32.totalorder %s1733_s23, %s1728_s30  ;;  %p1737_p3 = scmp.lt.u32.totalorder %s1728_s30, %s2061_s12 }
  0x97   : > { %p1732_p4 = pneg %p1731_p2 }
  0x98   : > { %p1736_p13 = por %p1735_p11, %p1734_p6 }
  0x9a   : > { %p1738_p7 = por %p1737_p3, %p1736_p13 }
  0x9c   : > { %p1739_p0 = pnand %p1738_p7, %p1732_p4 }
  0x9e   : > { %1742 = shalt.err (!%p1739_p0)
}
  0x9f   : > { %s1743_s11 = scalar_lea.vmem %s2065_s1, 1024  ;;  %s1840_s21 = smov [#allocation10]  }
  0xa0   : > { %p1744_p5 = scmp.ne.s32.totalorder %s2065_s1, %s1743_s11  ;;  %s1748_s10 = sshll.u32 %s1840_s21, 4  ;;  %s1749_s10 = int_to_ptr.vmem [resolvable:$false] %s1748_s10 }
  0xa1   : > { %s1750_s29 = scalar_lea.vmem %s1749_s10, 2048  ;;  %p1751_p10 = scmp.lt.s32.totalorder %s2065_s1, %s1749_s10 }
  0xa2   : > { %p1746_p1 = pnand %p1744_p5, %p2359_p12  ;;  %p1752_p2 = scmp.lt.s32.totalorder %s1750_s29, %s1743_s11 }
  0xa4   : > { %p1747_p9 = pneg %p1746_p1  ;;  %p1753_p6 = por %p1752_p2, %p1751_p10 }
  0xa6   : > { %p1754_p11 = pnand %p1753_p6, %p1747_p9 }
  0xa8   : > { %1757 = shalt.err (!%p1754_p11)
}
  0xa9   : > { %1525 = dma.hbm_to_vmem [thread:$0]  (!%p2360_p8), %s2061_s12, 1024, %s2065_s1, %s2023_s26, %s2353_s20, %s2353_s20, %s1836_s22  }
  0xaa   : > { %p2361_p12 = scmp.ne.s32.totalorder %s2345_s27, 0 }
  0xab   : > { %s2154_s19 = sand.u32 (!%p2361_p12), 1, %s1824_s14   ;;  %p2362_p4 = scmp.ne.s32.totalorder (!%p2361_p12), %s2340_s24, 0 }
  0xac   : > { %437 = sbr.rel (%p2361_p12) target bundleno = 1006 (0x3ee), region = 60  ;;  %s1319_s7 = sshll.u32 (!%p2361_p12), %s2154_s19, 4 }
  0xad   : > { %s440_s3 = scalar_lea.sflag (!%p2361_p12), [#allocation3], %s2154_s19  ;;  %s2158_s9 = scalar_lea.vmem (!%p2361_p12), [#allocation2], %s1319_s7 }
  0xb3   : > { %1803 = dma.done.wait (%p2362_p4), %s440_s3, 256  }
  0xb4   : > { %1805 = vsyncadd (%p2362_p4), %s440_s3, 4294967040  ;;  %p2363_p8 = scmp.eq.s32.totalorder %s1920_s17, 0 }
  0xb6   : > { %1807 = dma.done.wait (%p2363_p8), [#allocation6], 2048   ;;  %p2364_p13 = pmov %p2363_p8 }
  0xb7   : > { %s456_s1 = sand.u32 1, %s1920_s17   ;;  %s1322_s27 = sshll.u32 %s2154_s19, 6 }
  0xb8   : > { %1809 = vsyncadd (%p2364_p13), [#allocation6], 4294965248  ;;  %s457_s22 = scalar_lea.sflag [#allocation9], %s456_s1  ;;  %s2172_s15 = scalar_lea.vmem [#allocation8], %s1322_s27 }
  0xb9   : > { %1811 = dma.done.wait (%p2362_p4), %s457_s22, 2048  }
  0xba   : > { %1813 = vsyncadd (%p2362_p4), %s457_s22, 4294965248  ;;  %v2178_v0 = vld [vmem:[#allocation5] sm:$0xff]   ;;  %v2180_v1 = vld [vmem:[#allocation5 + $0x8] sm:$0xff]   ;;  %s469_s24 = scalar_lea.vmem [#allocation10], %s1322_s27  ;;  %p528_p3 = scmp.lt.s32.totalorder %s1920_s17, 2 }
  0xbb   : > { %1413 = vmatprep.subr.bf16.mxu0 %v2178_v0  ;;  %v1576_v2 = vld [vmem:[#allocation5 + $0x10] sm:$0xff]   ;;  %v1577_v4 = vld [vmem:[#allocation5 + $0x18] sm:$0xff]   ;;  %v1584_v5 = vld [vmem:[%s2172_s15] sm:$0xff]   ;;  %v559_v18 = vunpack.c.l.bf16 %v2180_v1  ;;  %v560_v19 = vunpack.c.h.bf16 %v2180_v1  ;;  %v557_v21 = vunpack.c.l.bf16 %v2178_v0  ;;  %v558_v22 = vunpack.c.h.bf16 %v2178_v0  ;;  %s2365_s18 = sld [smem:[#allocation25_spill]]  ;;  %s2366_s6 = sld [smem:[#allocation26_spill]] }
  0xbc   : > { %1414 = vmatpush3.bf16.msra.mxu0 %v2178_v0  ;;  %v1582_v3 = vld [vmem:[%s2158_s9] sm:$0xff]   ;;  %v1585_v6 = vld [vmem:[%s2172_s15 + $0x8] sm:$0xff]   ;;  %1433 = vmatprep.subr.bf16.mxu1 %v1584_v5  ;;  %v1587_v10 = vld [vmem:[%s2172_s15 + $0x18] sm:$0xff]   ;;  %s2204_s26 = scalar_select %p528_p3, %s1920_s17, 2 }
  0xbd   : > { %1415 = vmatprep.subr.bf16.mxu0 %v2180_v1  ;;  %1429 = vmatprep.mubr.bf16.mxu0 %v1582_v3  ;;  %v1578_v7 = vld [vmem:[#allocation5 + $0x20] sm:$0xff]   ;;  %v1586_v8 = vld [vmem:[%s2172_s15 + $0x10] sm:$0xff]   ;;  %v1579_v9 = vld [vmem:[#allocation5 + $0x28] sm:$0xff]   ;;  %s2367_s29 = sld [smem:[#allocation27_spill]]  ;;  %s1324_s3 = sshll.u32 %s2154_s19, 5 }
  0xbe   : > { %1434 = vmatpush3.bf16.msra.mxu1 %v1584_v5  ;;  %v1580_v11 = vld [vmem:[#allocation5 + $0x30] sm:$0xff]   ;;  %v1588_v12 = vld [vmem:[%s2172_s15 + $0x20] sm:$0xff]   ;;  %v1581_v13 = vld [vmem:[#allocation5 + $0x38] sm:$0xff]   ;;  %s530_s13 = scalar_lea.vmem %s2299_s5, %s2204_s26  ;;  %p2368_p7 = scmp.ne.s32.totalorder %s1920_s17, 0 }
  0xbf   : > { %1435 = vmatprep.subr.bf16.mxu1 %v1585_v6  ;;  %v1589_v14 = vld [vmem:[%s2172_s15 + $0x28] sm:$0xff]   ;;  %v1590_v16 = vld [vmem:[%s2172_s15 + $0x30] sm:$0xff]   ;;  %v1591_v17 = vld [vmem:[%s2172_s15 + $0x38] sm:$0xff]   ;;  %s2369_s22 = sld [smem:[#allocation23_spill]] (!%p2368_p7) }
  0xc0   : > { %1416 = vmatpush3.bf16.msra.mxu0 %v2180_v1  ;;  %v1583_v15 = vld [vmem:[%s2158_s9 + $0x8] sm:$0xff]   ;;  %v1592_v32 = vld [vmem:[%s469_s24] sm:$0xff]   ;;  %v1594_v34 = vld [vmem:[%s469_s24 + $0x10] sm:$0xff]   ;;  %s2223_s9 = scalar_lea.vmem [#allocation11], %s1324_s3 }
  0xc1   : > { %1417 = vmatprep.subr.bf16.mxu0 %v1576_v2  ;;  %v1593_v33 = vld [vmem:[%s469_s24 + $0x8] sm:$0xff]   ;;  %v1595_v35 = vld [vmem:[%s469_s24 + $0x18] sm:$0xff]   ;;  %v1596_v36 = vld [vmem:[%s469_s24 + $0x20] sm:$0xff]   ;;  %s533_s25 = scalar_lea.vmem %s2365_s18, %s2204_s26  ;;  %s536_s11 = scalar_lea.vmem %s2366_s6, %s2204_s26 }
  0xc2   : > { %1436 = vmatpush3.bf16.msra.mxu1 %v1585_v6  ;;  %v1597_v37 = vld [vmem:[%s469_s24 + $0x28] sm:$0xff]   ;;  %v1598_v38 = vld [vmem:[%s469_s24 + $0x30] sm:$0xff]   ;;  %v1599_v39 = vld [vmem:[%s469_s24 + $0x38] sm:$0xff]  }
  0xc3   : > { %1437 = vmatprep.subr.bf16.mxu1 %v1586_v8  ;;  %v1335_v41 = vld [vmem:[%s530_s13] ss:$0 sm:$0xff]  ;;  %s539_s7 = scalar_lea.vmem %s2367_s29, %s2204_s26 }
  0xc4   : > { %1418 = vmatpush3.bf16.msra.mxu0 %v1576_v2 }
  0xc5   : > { %1419 = vmatprep.subr.bf16.mxu0 %v1577_v4 }
  0xc6   : > { %1438 = vmatpush3.bf16.msra.mxu1 %v1586_v8 }
  0xc7   : > { %1439 = vmatprep.subr.bf16.mxu1 %v1587_v10 }
  0xc8   : > { %1420 = vmatpush3.bf16.msra.mxu0 %v1577_v4 }
  0xc9   : > { %1421 = vmatprep.subr.bf16.mxu0 %v1578_v7 }
  0xca   : > { %1440 = vmatpush3.bf16.msra.mxu1 %v1587_v10 }
  0xcb   : > { %1441 = vmatprep.subr.bf16.mxu1 %v1588_v12 }
  0xcc   : > { %1422 = vmatpush3.bf16.msra.mxu0 %v1578_v7 }
  0xcd   : > { %1423 = vmatprep.subr.bf16.mxu0 %v1579_v9 }
  0xce   : > { %1442 = vmatpush3.bf16.msra.mxu1 %v1588_v12 }
  0xcf   : > { %1443 = vmatprep.subr.bf16.mxu1 %v1589_v14 }
  0xd0   : > { %1424 = vmatpush3.bf16.msra.mxu0 %v1579_v9 }
  0xd1   : > { %1425 = vmatprep.subr.bf16.mxu0 %v1580_v11 }
  0xd2   : > { %1444 = vmatpush3.bf16.msra.mxu1 %v1589_v14 }
  0xd3   : > { %1445 = vmatprep.subr.bf16.mxu1 %v1590_v16 }
  0xd4   : > { %1426 = vmatpush3.bf16.msra.mxu0 %v1580_v11 }
  0xd5   : > { %1427 = vmatprep.subr.bf16.mxu0 %v1581_v13 }
  0xd6   : > { %1446 = vmatpush3.bf16.msra.mxu1 %v1590_v16  ;;  %v833_v16 = vlaneseq }
  0xd7   : > { %1447 = vmatprep.subr.bf16.mxu1 %v1591_v17 }
  0xd8   : > { %1428 = vmatpush3.bf16.msra.mxu0 %v1581_v13 }
  0xd9   : > { %1453 = vmatprep.subr.bf16.mxu0 %v1592_v32 }
  0xda   : > { %1448 = vmatpush3.bf16.msra.mxu1 %v1591_v17  ;;  %v834_v17 = vshrl.u32 %v833_v16, 7 }
  0xdb   : > { %1430 = vmatmul.mubr.bf16.vlgmr.msra.gmra.mrb[0].mxu0 %v1583_v15 }
  0xdc   : > { %1454 = vmatpush3.bf16.msra.mxu0 %v1592_v32 }
  0xdd   : > { %1455 = vmatprep.subr.bf16.mxu0 %v1593_v33 }
  0xe0   : > { %1456 = vmatpush3.bf16.msra.mxu0 %v1593_v33 }
  0xe1   : > { %1457 = vmatprep.subr.bf16.mxu0 %v1594_v34 }
  0xe4   : > { %1458 = vmatpush3.bf16.msra.mxu0 %v1594_v34 }
  0xe5   : > { %1459 = vmatprep.subr.bf16.mxu0 %v1595_v35 }
  0xe8   : > { %1460 = vmatpush3.bf16.msra.mxu0 %v1595_v35 }
  0xe9   : > { %1461 = vmatprep.subr.bf16.mxu0 %v1596_v36 }
  0xec   : > { %1462 = vmatpush3.bf16.msra.mxu0 %v1596_v36 }
  0xed   : > { %1463 = vmatprep.subr.bf16.mxu0 %v1597_v37 }
  0xf0   : > { %1464 = vmatpush3.bf16.msra.mxu0 %v1597_v37 }
  0xf1   : > { %1465 = vmatprep.subr.bf16.mxu0 %v1598_v38 }
  0xf4   : > { %1466 = vmatpush3.bf16.msra.mxu0 %v1598_v38  ;;  %v1345_v38 = vld [vmem:[%s539_s7] ss:$0 sm:$0xff] }
  0xf5   : > { %1467 = vmatprep.subr.bf16.mxu0 %v1599_v39 }
  0xf8   : > { %1468 = vmatpush3.bf16.msra.mxu0 %v1599_v39 }
 0x1ae   : > { %v1431_v20 = vpop.f32.mrb[0].mxu0 }
 0x1af   : > { %v659_v23 = vpop.f32.mrb[1].mxu0  ;;  %v676_v25 = vadd.f32 %v1431_v20, %v559_v18  ;;  %v828_v18 = vld [vmem:[%s533_s25] sm:$0x1] }
 0x1b0   : > { %v1432_v24 = vpop.f32.mrb[2].mxu0  ;;  %v674_v28 = vadd.f32 %v659_v23, %v557_v21  ;;  %v1344_v23 = vld [vmem:[%s536_s11] ss:$0 sm:$0xff] }
 0x1b1   : > { %v677_v26 = vadd.f32 %v1432_v24, %v560_v19  ;;  %v662_v27 = vpop.f32.mrb[3].mxu0  ;;  %v835_v19 = vsub.s32 0, %v834_v17 }
 0x1b2   : > { %v675_v29 = vadd.f32 %v662_v27, %v558_v22 }
 0x1b3   : > { %v679_v30 = vpack.c.bf16 %v677_v26, %v676_v25 }
 0x1b4   : > { %v678_v31 = vpack.c.bf16 %v675_v29, %v674_v28 }
 0x1b6   : > { %1449 = vmatprep.mubr.bf16.mxu1 %v678_v31 }
 0x1b7   : > { %1450 = vmatmul.mubr.bf16.vlgmr.msra.gmra.mrb[0].mxu1 %v679_v30 }
 0x28a   : > { %v1451_v40 = vpop.f32.mrb[0].mxu1 }
 0x28b   : > { %v785_v42 = vpop.f32.mrb[1].mxu1  ;;  %v794_v47 = vadd.f32 %v1451_v40, %v1335_v41 }
 0x28c   : > { %v1452_v43 = vpop.f32.mrb[2].mxu1  ;;  %v786_v45 = vadd.f32 %v1335_v41, %v785_v42 }
 0x28d   : > { %v788_v44 = vpop.f32.mrb[3].mxu1  ;;  %v797_v49 = vadd.f32 %v1452_v43, %v1335_v41 }
 0x28e   : > { %v789_v46 = vadd.f32 %v1335_v41, %v788_v44 }
 0x290   : > { %v800_v48 = vadd.f32 %v789_v46, %v786_v45 }
 0x292   : > { %v801_v50 = vadd.f32 %v800_v48, %v794_v47  ;;  %v1605_v48 = vld [vmem:[#allocation7 + $0x8] sm:$0xff] (!%p2368_p7)  }
 0x294   : > { %v802_v51 = vadd.f32 %v801_v50, %v797_v49  ;;  %v1607_v50 = vld [vmem:[#allocation7 + $0x18] sm:$0xff] (!%p2368_p7)  }
 0x296   : > { %v803_v52 = vrot.slane %v802_v51, 4 }
 0x298   : > { %v804_v53 = vadd.f32 %v803_v52, %v802_v51  ;;  %v1608_v51 = vld [vmem:[#allocation7 + $0x20] sm:$0xff] (!%p2368_p7)   ;;  %v1609_v52 = vld [vmem:[#allocation7 + $0x28] sm:$0xff] (!%p2368_p7)  }
 0x29a   : > { %v805_v54 = vrot.slane %v804_v53, 2 }
 0x29c   : > { %v806_v55 = vadd.f32 %v805_v54, %v804_v53  ;;  %v1611_v53 = vld [vmem:[#allocation7 + $0x38] sm:$0xff] (!%p2368_p7)   ;;  %v1355_v54 = vld [vmem:[%s2369_s22] ss:$0 sm:$0xff] (!%p2368_p7) }
 0x29e   : > { %v807_v56 = vrot.slane %v806_v55, 1 }
 0x2a0   : > { %v808_v57 = vadd.f32 %v807_v56, %v806_v55 }
 0x2a2   : > { %v809_v58 = vmul.f32 0.03125, %v808_v57 }
 0x2a4   : > { %v810_v59 = vsub.f32 %v786_v45, %v809_v58  ;;  %v811_v60 = vsub.f32 %v789_v46, %v809_v58  ;;  %v812_v61 = vsub.f32 %v794_v47, %v809_v58  ;;  %v813_v62 = vsub.f32 %v797_v49, %v809_v58  ;;  %v1604_v47 = vld [vmem:[#allocation7] sm:$0xff] (!%p2368_p7)   ;;  %v1606_v49 = vld [vmem:[#allocation7 + $0x10] sm:$0xff] (!%p2368_p7)  }
 0x2a5   : > { %1473 = vmatprep.subr.bf16.mxu0 (!%p2368_p7), %v1604_v47 }
 0x2a6   : > { %v814_v63 = vmul.f32 %v810_v59, %v810_v59  ;;  %v815_v2 = vmul.f32 %v811_v60, %v811_v60  ;;  %v816_v3 = vmul.f32 %v812_v61, %v812_v61  ;;  %v817_v5 = vmul.f32 %v813_v62, %v813_v62 }
 0x2a8   : > { %v818_v4 = vadd.f32 %v815_v2, %v814_v63 }
 0x2aa   : > { %v819_v6 = vadd.f32 %v818_v4, %v816_v3 }
 0x2ac   : > { %v820_v7 = vadd.f32 %v819_v6, %v817_v5 }
 0x2ae   : > { %v821_v8 = vrot.slane %v820_v7, 4 }
 0x2b0   : > { %v822_v9 = vadd.f32 %v821_v8, %v820_v7 }
 0x2b2   : > { %v823_v10 = vrot.slane %v822_v9, 2 }
 0x2b4   : > { %v824_v11 = vadd.f32 %v823_v10, %v822_v9 }
 0x2b6   : > { %v825_v12 = vrot.slane %v824_v11, 1 }
 0x2b8   : > { %v826_v13 = vadd.f32 %v825_v12, %v824_v11 }
 0x2ba   : > { %v827_v14 = vmul.f32 0.03125, %v826_v13 }
 0x2bc   : > { %v829_v15 = vadd.f32 1e-05, %v827_v14 }
 0x2be   : > { %1602 = vrsqrt.f32 %v829_v15 }
 0x2c8   : > { %v1603_v20 = vpop.eup %1602 }
 0x2c9   : > { %v831_v21 = vmul.f32 %v1603_v20, %v828_v18 }
 0x2cb   : > { %v836_v22 = vrot.slane %v831_v21, %v835_v19 }
 0x2cd   : > { %v839_v24 = vmul.f32 %v836_v22, %v811_v60  ;;  %v838_v25 = vmul.f32 %v836_v22, %v810_v59  ;;  %v840_v26 = vmul.f32 %v836_v22, %v812_v61  ;;  %v841_v27 = vmul.f32 %v836_v22, %v813_v62 }
 0x2cf   : > { %v849_v28 = vadd.f32 %v1344_v23, %v838_v25  ;;  %v850_v29 = vadd.f32 %v1344_v23, %v839_v24  ;;  %v851_v30 = vadd.f32 %v1344_v23, %v840_v26  ;;  %v852_v31 = vadd.f32 %v1344_v23, %v841_v27 }
 0x2d1   : > { %v853_v32 = vmax.f32 %v849_v28, 0.0  ;;  %v854_v33 = vmax.f32 %v850_v29, 0.0  ;;  %v855_v34 = vmax.f32 %v851_v30, 0.0  ;;  %v856_v35 = vmax.f32 %v852_v31, 0.0 }
 0x2d3   : > { %v857_v36 = vpack.c.bf16 %v854_v33, %v853_v32  ;;  %v858_v37 = vpack.c.bf16 %v856_v35, %v855_v34 }
 0x2d5   : > { %1469 = vmatprep.mubr.bf16.mxu0 %v857_v36 }
 0x2d6   : > { %1470 = vmatmul.mubr.bf16.vlgmr.msra.gmra.mrb[4].mxu0 %v858_v37 }
 0x2d7   : > { %1489 = vmatprep.mubr.bf16.mxu0 (!%p2368_p7), %v2178_v0  ;;  %1474 = vmatpush3.bf16.msra.mxu0 (!%p2368_p7), %v1604_v47  ;;  %v1610_v0 = vld [vmem:[#allocation7 + $0x30] sm:$0xff] (!%p2368_p7)  }
 0x2d8   : > { %1475 = vmatprep.subr.bf16.mxu0 (!%p2368_p7), %v1605_v48 }
 0x2db   : > { %1476 = vmatpush3.bf16.msra.mxu0 (!%p2368_p7), %v1605_v48 }
 0x2dc   : > { %1477 = vmatprep.subr.bf16.mxu0 (!%p2368_p7), %v1606_v49 }
 0x2df   : > { %1478 = vmatpush3.bf16.msra.mxu0 (!%p2368_p7), %v1606_v49 }
 0x2e0   : > { %1479 = vmatprep.subr.bf16.mxu0 (!%p2368_p7), %v1607_v50 }
 0x2e3   : > { %1480 = vmatpush3.bf16.msra.mxu0 (!%p2368_p7), %v1607_v50 }
 0x2e4   : > { %1481 = vmatprep.subr.bf16.mxu0 (!%p2368_p7), %v1608_v51 }
 0x2e7   : > { %1482 = vmatpush3.bf16.msra.mxu0 (!%p2368_p7), %v1608_v51 }
 0x2e8   : > { %1483 = vmatprep.subr.bf16.mxu0 (!%p2368_p7), %v1609_v52 }
 0x2eb   : > { %1484 = vmatpush3.bf16.msra.mxu0 (!%p2368_p7), %v1609_v52 }
 0x2ec   : > { %1485 = vmatprep.subr.bf16.mxu0 (!%p2368_p7), %v1610_v0 }
 0x2ef   : > { %1486 = vmatpush3.bf16.msra.mxu0 (!%p2368_p7), %v1610_v0 }
 0x2f0   : > { %1487 = vmatprep.subr.bf16.mxu0 (!%p2368_p7), %v1611_v53 }
 0x2f3   : > { %1488 = vmatpush3.bf16.msra.mxu0 (!%p2368_p7), %v1611_v53 }
 0x2f6   : > { %1490 = vmatmul.mubr.bf16.vlgmr.msra.gmra.mrb[0].mxu0 (!%p2368_p7), %v2180_v1 }
 0x3a9   : > { %v1471_v39 = vpop.f32.mrb[4].mxu0  ;;  %986 = sbr.rel (%p2368_p7) target bundleno = 978 (0x3d2), region = 84 }
 0x3aa   : > { %v973_v40 = vadd.f32 %v1471_v39, %v1345_v38  ;;  %v964_v41 = vpop.f32.mrb[5].mxu0 }
 0x3ab   : > { %v965_v42 = vadd.f32 %v1345_v38, %v964_v41  ;;  %v1472_v43 = vpop.f32.mrb[6].mxu0 }
 0x3ac   : > { %981 = vst [vmem:[%s2223_s9 + $0x10] sm:$0xff] %v973_v40  ;;  %v976_v44 = vadd.f32 %v1472_v43, %v1345_v38  ;;  %v967_v45 = vpop.f32.mrb[7].mxu0 }
 0x3ad   : > { %979 = vst [vmem:[%s2223_s9] sm:$0xff] %v965_v42  ;;  %v968_v46 = vadd.f32 %v1345_v38, %v967_v45 }
 0x3ae   : > { %982 = vst [vmem:[%s2223_s9 + $0x18] sm:$0xff] %v976_v44 }
 0x3af   : > { %980 = vst [vmem:[%s2223_s9 + $0x8] sm:$0xff] %v968_v46 }
 0x3b3   : > { %v989_v55 = vld [vmem:[%s2223_s9 + $0x10] sm:$0xff] }
 0x3b4   : > { %v987_v58 = vld [vmem:[%s2223_s9] sm:$0xff] }
 0x3b5   : > { %v990_v61 = vld [vmem:[%s2223_s9 + $0x18] sm:$0xff] }
 0x3b6   : > { %v988_v3 = vld [vmem:[%s2223_s9 + $0x8] sm:$0xff] }
 0x3c9   : > { %v1491_v56 = vpop.f32.mrb[0].mxu0 }
 0x3ca   : > { %v1105_v57 = vadd.f32 %v1491_v56, %v1355_v54  ;;  %v1096_v59 = vpop.f32.mrb[1].mxu0 }
 0x3cb   : > { %v1097_v60 = vadd.f32 %v1355_v54, %v1096_v59  ;;  %v1492_v62 = vpop.f32.mrb[2].mxu0 }
 0x3cc   : > { %v1113_v63 = vadd.f32 %v1105_v57, %v989_v55  ;;  %v1108_v2 = vadd.f32 %v1492_v62, %v1355_v54  ;;  %v1099_v1 = vpop.f32.mrb[3].mxu0 }
 0x3cd   : > { %v1111_v4 = vadd.f32 %v1097_v60, %v987_v58  ;;  %v1100_v5 = vadd.f32 %v1355_v54, %v1099_v1 }
 0x3ce   : > { %1117 = vst [vmem:[%s2223_s9 + $0x10] sm:$0xff] %v1113_v63  ;;  %v1114_v6 = vadd.f32 %v1108_v2, %v990_v61 }
 0x3cf   : > { %1115 = vst [vmem:[%s2223_s9] sm:$0xff] %v1111_v4  ;;  %v1112_v7 = vadd.f32 %v1100_v5, %v988_v3 }
 0x3d0   : > { %1118 = vst [vmem:[%s2223_s9 + $0x18] sm:$0xff] %v1114_v6 }
 0x3d1   : > { %1116 = vst [vmem:[%s2223_s9 + $0x8] sm:$0xff] %v1112_v7 }
 0x3d2 PF: > { %s2370_s15 = sld [smem:[#allocation20_spill]]  ;;  %s1372_s24 = sshll.u32 %s1920_s17, 9 }
 0x3d3   : > { %s2371_s12 = sld [smem:[#allocation28_spill]]  ;;  %s1133_s28 = sshll.u32 %s2223_s9, 4  ;;  %s2251_s28 = int_to_ptr.vmem [resolvable:$true] %s1133_s28 }
 0x3d4   : > { %s1120_s30 = scalar_lea.sflag [#allocation4], %s2154_s19  ;;  %s1758_s18 = scalar_lea.vmem %s2251_s28, 512 }
 0x3d5   : > { %p1759_p0 = scmp.ne.s32.totalorder %s2251_s28, %s1758_s18  ;;  %s1841_s25 = smov [#allocation11]  }
 0x3d6   : > { %s1762_s23 = sshll.u32 %s1841_s25, 4  ;;  %s1763_s23 = int_to_ptr.vmem [resolvable:$false] %s1762_s23 }
 0x3d7   : > { %s1764_s17 = scalar_lea.vmem %s1763_s23, 1024  ;;  %p1765_p10 = scmp.lt.s32.totalorder %s2251_s28, %s1763_s23 }
 0x3d8   : > { %p2372_p5 = scmp.ne.s32.totalorder %s2370_s15, 0  ;;  %p1766_p2 = scmp.lt.s32.totalorder %s1764_s17, %s1758_s18 }
 0x3d9   : > { %s2248_s13 = scalar_lea.hbm %s2371_s12, %s1372_s24 }
 0x3da   : > { %p1760_p1 = pnand %p1759_p0, %p2372_p5  ;;  %p1767_p6 = por %p1766_p2, %p1765_p10 }
 0x3dc   : > { %p1761_p9 = pneg %p1760_p1 }
 0x3de   : > { %p1768_p11 = pnand %p1767_p6, %p1761_p9 }
 0x3e0   : > { %1771 = shalt.err (!%p1768_p11)
}
 0x3e1   : > { %s1772_s4 = scalar_lea.hbm %s2248_s13, 512  ;;  %s1776_s21 = scalar_lea.hbm %s2371_s12, 1536 }
 0x3e2   : > { %p1773_p12 = scmp.ne.s32.totalorder %s2248_s13, %s1772_s4  ;;  %p1777_p13 = scmp.lt.u32.totalorder %s2248_s13, %s2371_s12 }
 0x3e3   : > { %p1778_p3 = scmp.lt.u32.totalorder %s1776_s21, %s1772_s4  ;;  %p1780_p0 = scmp.lt.u32.totalorder %s1772_s4, %s2248_s13 }
 0x3e4   : > { %p1774_p4 = pnand %p1773_p12, %p2372_p5 }
 0x3e5   : > { %p1779_p7 = por %p1778_p3, %p1777_p13 }
 0x3e6   : > { %p1775_p8 = pneg %p1774_p4 }
 0x3e7   : > { %p1781_p1 = por %p1780_p0, %p1779_p7 }
 0x3e9   : > { %p1782_p9 = pnand %p1781_p1, %p1775_p8 }
 0x3eb   : > { %1785 = shalt.err (!%p1782_p9)
}
 0x3ec   : > { %s1842_s7 = smov 128   ;;  %s1843_s3 = smov 8  }
 0x3ed   : > { %1507 = dma.vmem_to_hbm [thread:$0]  (%p2372_p5), %s2251_s28, 512, %s2248_s13, %s1120_s30, %s1842_s7, %s1842_s7, %s1843_s3  }
 0x3ee PF: > { %s2373_s9 = sld [smem:[#allocation16_spill]]  ;;  %s2374_s1 = sld [smem:[#allocation21_spill]] }
 0x3ef   : > { %p1535_p10 = scmp.ge.s32.totalorder %s1832_s16, 2 }
 0x3f4   : > { %s1148_s27 = sand.u32 1, %s2373_s9   ;;  %p2375_p2 = scmp.ne.s32.totalorder %s2374_s1, 0 }
 0x3f5   : > { %s1149_s22 = scalar_lea.sflag [#allocation4], %s1148_s27 }
 0x3f6   : > { %p1527_p6 = pnand %p1535_p10, %p2375_p2 }
 0x3f8   : > { %1815 = dma.done.wait (!%p1527_p6), %s1149_s22, 512  }
 0x3f9   : > { %1817 = vsyncadd (!%p1527_p6), %s1149_s22, 4294966784  ;;  %s2376_s16 = sld [smem:[#allocation18_spill]]  ;;  %s2377_s24 = sld [smem:[#allocation17_spill]] }
 0x3fa   : > { %s2378_s15 = sld [smem:[#allocation19_spill]]  ;;  %s2379_s13 = smov %s1824_s14 }
 0x3ff   : > { %p27_p11 = scmp.ge.s32.totalorder %s2376_s16, 5   ;;  %s2380_s14 = smov %s2377_s24 }
 0x401   :  { %29 = sbr.rel (!%p27_p11) target bundleno = 16 (0x10), region = 153 }
 0x408   :  { %1154 = vsyncpa [#allocation3], 1 }
 0x409   :  { %1156 = vsyncpa [#allocation3 + $0x1], 1 }
 0x40a   :  { %1157 = vsyncpa [#allocation6], 1 }
 0x40b   :  { %1158 = vsyncpa [#allocation9], 1 }
 0x40c   :  { %1160 = vsyncpa [#allocation9 + $0x1], 1 }
 0x40d   :  { %1161 = vsyncpa [#allocation4], 1 }
 0x40e   :  { %1163 = vsyncpa [#allocation4 + $0x1], 1 }

</bundles_post_ra>
